<compile_context>
chip_gen: v5e
topology: v5e:2x2
jax: 0.10.0
libtpu: 0.0.40
codegen_flags: <defaults>
</compile_context>

<pallas_src>
import jax
import jax.numpy as jnp
from jax.experimental import pallas as pl
from jax.experimental.pallas import tpu as pltpu


def _round_up(x: int, m: int) -> int:
    return ((x + m - 1) // m) * m


def _tensorcores_per_chip() -> int:
    try:
        kind = jax.devices()[0].device_kind.lower()
    except Exception:
        return 1
    return 2 if ("v7" in kind or "7x" in kind) else 1


def _pick_k_tile(F: int, max_tk: int = 2048):
    """Largest lane-aligned (128-multiple) K tile <= max_tk that divides F, so x
    never needs a per-call padded copy.  Falls back to padding when F has no
    such divisor."""
    best = None
    t = 128
    while t <= max_tk:
        if F % t == 0:
            best = t
        t += 128
    if best is not None:
        return best, F
    # TODO(synk): mask the tail K tile in-kernel instead of padding x per call.
    tk = min(max_tk, _round_up(F, 128))
    return tk, _round_up(F, tk)


def _gemm_kernel(x_ref, w_ref, o_ref):
    # Grid = (k_split, M_tiles, N_tiles, K_steps); K is innermost / "arbitrary".
    k = pl.program_id(3)

    @pl.when(k == 0)
    def _():
        o_ref[...] = jnp.zeros_like(o_ref)

    # bf16 x bf16 -> f32 MXU matmul, accumulated directly in the resident f32
    # output block (no scratch accumulator, no final copy).
    o_ref[...] += jnp.dot(
        x_ref[...].astype(jnp.bfloat16),
        w_ref[...],
        preferred_element_type=jnp.float32,
    )


def prepare_params(mean_c, std_c, w, b, spatial, *, max_tk=2048):
    """One-time (per model) parameter preparation — amortized across calls.

    Folds the per-channel normalization into the classifier:
        ((x - mean)/std) @ W + b == x @ (W * invstd_f[:, None]) + (b - (mean_f*invstd_f) @ W)
    then casts the folded W to bf16 and pads it to the kernel tile grid.
    """
    F, N = w.shape
    mean_f = jnp.repeat(mean_c.astype(jnp.float32), spatial)         # (F,)
    invstd_f = jnp.repeat(1.0 / std_c.astype(jnp.float32), spatial)  # (F,)

    w_f32 = w.astype(jnp.float32)
    w_fold = w_f32 * invstd_f[:, None]
    b_fold = b.astype(jnp.float32) - (mean_f * invstd_f) @ w_f32     # (N,) f32

    tk, Fp = _pick_k_tile(F, max_tk)
    if N < 128:
        tn, Np = N, N       # small head: don't pad the dominant W stream to 128 lanes
    else:
        tn, Np = 128, _round_up(N, 128)

    w_p = jnp.pad(w_fold, ((0, Fp - F), (0, Np - N))).astype(jnp.bfloat16)

    return dict(
        F=F, N=N, Fp=Fp, Np=Np, tk=tk, tn=tn,
        k_splits=_tensorcores_per_chip(),
        w=w_p, b=b_fold,
    )


def preprocessed_model_forward(x_nchw, params):
    """Forward pass of PreProcessedModel: main_model(transform(x))."""
    B = x_nchw.shape[0]
    F, N = params["F"], params["N"]
    Fp, Np = params["Fp"], params["Np"]
    tk, tn = params["tk"], params["tn"]
    w_p, b_f = params["w"], params["b"]

    # Flatten NCHW row-major (metadata-only reshape; matches the W row order).
    x = x_nchw.reshape(B, F).astype(jnp.float32)

    # M tiling: full-dim block for small batches (no batch padding / copy).
    if B <= 128:
        tm, Mp = B, B
    else:
        tm, Mp = 128, _round_up(B, 128)
    if Mp != B:
        x = jnp.pad(x, ((0, Mp - B), (0, 0)))
    if Fp != F:
        x = jnp.pad(x, ((0, 0), (0, Fp - F)))

    k_steps_total = Fp // tk
    s = params["k_splits"]
    if s < 2 or k_steps_total < s or k_steps_total % s != 0:
        s = 1
    k_steps = k_steps_total // s

    grid = (s, Mp // tm, Np // tn, k_steps)

    x_map = lambda si, i, j, k: (i, si * k_steps + k)
    w_map = lambda si, i, j, k: (si * k_steps + k, j)
    o_map = lambda si, i, j, k: (si, i, j)

    # VMEM limit sized from the actual double-buffered tiles (+ headroom).
    tile_bytes = 2 * (tm * tk * 4) + 2 * (tk * tn * 2) + 2 * (tm * tn * 4)
    vmem_limit = int(min(64 * 1024 * 1024, max(16 * 1024 * 1024, 4 * tile_bytes)))

    cost = pl.CostEstimate(
        flops=2 * Mp * Fp * Np,
        transcendentals=0,
        bytes_accessed=Mp * Fp * 4 + Fp * Np * 2 + s * Mp * Np * 4,
    )

    out_slabs = pl.pallas_call(
        _gemm_kernel,
        out_shape=jax.ShapeDtypeStruct((s, Mp, Np), jnp.float32),
        grid_spec=pltpu.PrefetchScalarGridSpec(
            num_scalar_prefetch=0,
            grid=grid,
            in_specs=[
                pl.BlockSpec((tm, tk), x_map),   # activations (f32 stream, cast in-kernel)
                pl.BlockSpec((tk, tn), w_map),   # folded weights (bf16 stream)
            ],
            out_specs=pl.BlockSpec((None, tm, tn), o_map),
        ),
        compiler_params=pltpu.CompilerParams(
            dimension_semantics=("parallel", "parallel", "parallel", "arbitrary"),
            vmem_limit_bytes=vmem_limit,
        ),
        cost_estimate=cost,
    )(x, w_p)

    out = out_slabs[0] if s == 1 else jnp.sum(out_slabs, axis=0)
    return out[:B, :N] + b_f[None, :]


if __name__ == "__main__":
    # Small, deterministic shapes consistent with the module's forward.
    B, C, H, W = 2, 4, 16, 16
    NUM_CLASSES = 16
    F = C * H * W

    key = jax.random.PRNGKey(0)
    kx, kw, kb, km, ks = jax.random.split(key, 5)

    x = jax.random.normal(kx, (B, C, H, W), dtype=jnp.float32)
    weight = jax.random.normal(kw, (F, NUM_CLASSES), dtype=jnp.float32) * 0.02
    bias = jax.random.normal(kb, (NUM_CLASSES,), dtype=jnp.float32) * 0.01
    mean_c = jax.random.normal(km, (C,), dtype=jnp.float32) * 0.1
    std_c = jax.random.uniform(ks, (C,), dtype=jnp.float32, minval=0.5, maxval=1.5)

    params = prepare_params(mean_c, std_c, weight, bias, H * W)
    out = preprocessed_model_forward(x, params)
    out = jax.block_until_ready(out)
    assert out.shape == (B, NUM_CLASSES)

    # Reference 1: same normalization fold + bf16 rounding as the kernel (tight).
    invstd_f = jnp.repeat(1.0 / std_c, H * W)
    mean_f = jnp.repeat(mean_c, H * W)
    w_fold = weight * invstd_f[:, None]
    b_fold = bias - (mean_f * invstd_f) @ weight
    ref_bf16 = (
        jnp.dot(
            x.reshape(B, F).astype(jnp.bfloat16).astype(jnp.float32),
            w_fold.astype(jnp.bfloat16).astype(jnp.float32),
            preferred_element_type=jnp.float32,
        )
        + b_fold[None, :]
    )
    assert jnp.allclose(out, ref_bf16, atol=2e-3, rtol=2e-3)

    # Reference 2: pure f32 semantics of the PyTorch module (coarse, bf16 inputs).
    xn = (x - mean_c[None, :, None, None]) / std_c[None, :, None, None]
    ref_f32 = xn.reshape(B, F) @ weight + bias[None, :]
    assert jnp.allclose(out, ref_f32, atol=3e-2, rtol=3e-2)

    print("KERNEL_OK")
</pallas_src>

<mosaic_0001>
module attributes {stable_mosaic.version = 11 : i64} {
  func.func @_gemm_kernel(%arg0: i32, %arg1: i32, %arg2: i32, %arg3: i32, %arg4: memref<2x1024xf32, #tpu.memory_space<vmem>>, %arg5: memref<1024x16xbf16, #tpu.memory_space<vmem>>, %arg6: memref<1x2x16xf32, #tpu.memory_space<vmem>>) attributes {dimension_semantics = [#tpu.dimension_semantics<parallel>, #tpu.dimension_semantics<parallel>, #tpu.dimension_semantics<parallel>, #tpu.dimension_semantics<arbitrary>], iteration_bounds = array<i64: 1, 1, 1, 1>, scalar_prefetch = 0 : i64, scratch_operands = 0 : i64, tpu.core_type = #tpu.core_type<tc>, window_params = [{transform_indices = @transform_0, window_bounds = array<i64: 2, 1024>}, {transform_indices = @transform_1, window_bounds = array<i64: 1024, 16>}, {transform_indices = @transform_2, window_bounds = array<i64: 1, 2, 16>}]} {
    %c0_i32 = arith.constant 0 : i32
    %0 = arith.cmpi eq, %arg3, %c0_i32 : i32
    %1 = arith.extui %0 : i1 to i32
    %c0_i32_0 = arith.constant 0 : i32
    %2 = arith.cmpi ne, %1, %c0_i32_0 : i32
    scf.if %2 {
      %cst_10 = arith.constant 0.000000e+00 : f32
      %13 = vector.broadcast %cst_10 : f32 to vector<2x16xf32>
      %c0_11 = arith.constant 0 : index
      %c0_12 = arith.constant 0 : index
      %c0_13 = arith.constant 0 : index
      %14 = vector.load %arg6[%c0_11, %c0_12, %c0_13] : memref<1x2x16xf32, #tpu.memory_space<vmem>>, vector<1x2x16xf32>
      %15 = vector.shape_cast %14 : vector<1x2x16xf32> to vector<2x16xf32>
      %16 = vector.shape_cast %13 : vector<2x16xf32> to vector<1x2x16xf32>
      tpu.vector_store %arg6[%c0_11, %c0_12, %c0_13], %16 {strides = array<i32>} : memref<1x2x16xf32, #tpu.memory_space<vmem>>, vector<1x2x16xf32>,
    } else {
    }
    %c0 = arith.constant 0 : index
    %c0_1 = arith.constant 0 : index
    %c0_2 = arith.constant 0 : index
    %3 = vector.load %arg6[%c0, %c0_1, %c0_2] : memref<1x2x16xf32, #tpu.memory_space<vmem>>, vector<1x2x16xf32>
    %4 = vector.shape_cast %3 : vector<1x2x16xf32> to vector<2x16xf32>
    %c0_3 = arith.constant 0 : index
    %c0_4 = arith.constant 0 : index
    %5 = vector.load %arg4[%c0_3, %c0_4] : memref<2x1024xf32, #tpu.memory_space<vmem>>, vector<2x1024xf32>
    %6 = arith.truncf %5 : vector<2x1024xf32> to vector<2x1024xbf16>
    %c0_5 = arith.constant 0 : index
    %c0_6 = arith.constant 0 : index
    %7 = vector.load %arg5[%c0_5, %c0_6] : memref<1024x16xbf16, #tpu.memory_space<vmem>>, vector<1024x16xbf16>
    %cst = arith.constant dense<0.000000e+00> : vector<2x16xf32>
    %8 = tpu.matmul %6, %7, %cst {dimension_numbers = #tpu.dot_dimension_numbers<[1], [0], [0], [1], [0, 0, 1, 1], [], []>} : vector<2x1024xbf16>, vector<1024x16xbf16>, vector<2x16xf32> -> vector<2x16xf32>
    %9 = arith.addf %4, %8 : vector<2x16xf32>
    %c0_7 = arith.constant 0 : index
    %c0_8 = arith.constant 0 : index
    %c0_9 = arith.constant 0 : index
    %10 = vector.load %arg6[%c0_7, %c0_8, %c0_9] : memref<1x2x16xf32, #tpu.memory_space<vmem>>, vector<1x2x16xf32>
    %11 = vector.shape_cast %10 : vector<1x2x16xf32> to vector<2x16xf32>
    %12 = vector.shape_cast %9 : vector<2x16xf32> to vector<1x2x16xf32>
    tpu.vector_store %arg6[%c0_7, %c0_8, %c0_9], %12 {strides = array<i32>} : memref<1x2x16xf32, #tpu.memory_space<vmem>>, vector<1x2x16xf32>,
    return
  }
  func.func @transform_0(%arg0: i32, %arg1: i32, %arg2: i32, %arg3: i32) -> (i32, i32) {
    %c1_i32 = arith.constant 1 : i32
    %0 = arith.muli %arg0, %c1_i32 : i32
    %1 = arith.addi %0, %arg3 : i32
    %c0_i32 = arith.constant 0 : i32
    return %arg1, %1 : i32, i32
  }
  func.func @transform_1(%arg0: i32, %arg1: i32, %arg2: i32, %arg3: i32) -> (i32, i32) {
    %c1_i32 = arith.constant 1 : i32
    %0 = arith.muli %arg0, %c1_i32 : i32
    %1 = arith.addi %0, %arg3 : i32
    %c0_i32 = arith.constant 0 : i32
    return %1, %arg2 : i32, i32
  }
  func.func @transform_2(%arg0: i32, %arg1: i32, %arg2: i32, %arg3: i32) -> (i32, i32, i32) {
    %c0_i32 = arith.constant 0 : i32
    return %arg0, %arg1, %arg2 : i32, i32, i32
  }
}

</mosaic_0001>

<bundles_post_ra>
// kernel: tpu_custom_call.1
= control target key start
LH: loop header
LB: loop body
LE: loop exit
PB: predicated region body
PF: predicated region fallthrough
CT: control target
= control target key end

     0   :  { %s1309_s0 = inlined_call_operand.vmem [shape: f32[2,1024], index: 0, kind: input, shape index: {}]   ;;  %s1310_s1 = inlined_call_operand.vmem [shape: bf16[1024,16], index: 1, kind: input, shape index: {}]   ;;  %s1311_s2 = inlined_call_operand.hbm [shape: f32[1,2,16], index: 2, kind: output, shape index: {}]  }
   0x1   :  { %v1004_v0 = vld [vmem:[%s1310_s1 + $0x38] sm:$0xff]  ;;  %v1003_v4 = vld [vmem:[%s1310_s1 + $0x30] sm:$0xff]  ;;  %v1002_v8 = vld [vmem:[%s1310_s1 + $0x28] sm:$0xff] }
   0x2   :  { %v1012_v1 = vld [vmem:[%s1310_s1 + $0x78] sm:$0xff]  ;;  %606 = vmatpush.bf16.msra.mxu0 %v1004_v0  ;;  %v1011_v5 = vld [vmem:[%s1310_s1 + $0x70] sm:$0xff]  ;;  %v1010_v9 = vld [vmem:[%s1310_s1 + $0x68] sm:$0xff] }
   0x3   :  { %v1020_v2 = vld [vmem:[%s1310_s1 + $0xb8] sm:$0xff]  ;;  %619 = vmatpush.bf16.msra.mxu1 %v1012_v1  ;;  %v1019_v6 = vld [vmem:[%s1310_s1 + $0xb0] sm:$0xff]  ;;  %v1018_v10 = vld [vmem:[%s1310_s1 + $0xa8] sm:$0xff] }
   0x4   :  { %v1028_v3 = vld [vmem:[%s1310_s1 + $0xf8] sm:$0xff]  ;;  %632 = vmatpush.bf16.msra.mxu2 %v1020_v2  ;;  %v1027_v7 = vld [vmem:[%s1310_s1 + $0xf0] sm:$0xff]  ;;  %v1026_v11 = vld [vmem:[%s1310_s1 + $0xe8] sm:$0xff] }
   0x5   :  { %645 = vmatpush.bf16.msra.mxu3 %v1028_v3  ;;  %v1001_v12 = vld [vmem:[%s1310_s1 + $0x20] sm:$0xff]  ;;  %v1000_v17 = vld [vmem:[%s1310_s1 + $0x18] sm:$0xff]  ;;  %v999_v21 = vld [vmem:[%s1310_s1 + $0x10] sm:$0xff] }
   0x6   :  { %607 = vmatpush.bf16.msra.mxu0 %v1003_v4  ;;  %v1009_v13 = vld [vmem:[%s1310_s1 + $0x60] sm:$0xff]  ;;  %v1008_v18 = vld [vmem:[%s1310_s1 + $0x58] sm:$0xff]  ;;  %v1007_v22 = vld [vmem:[%s1310_s1 + $0x50] sm:$0xff] }
   0x7   :  { %620 = vmatpush.bf16.msra.mxu1 %v1011_v5  ;;  %v1017_v14 = vld [vmem:[%s1310_s1 + $0xa0] sm:$0xff]  ;;  %v1016_v19 = vld [vmem:[%s1310_s1 + $0x98] sm:$0xff] }
   0x8   :  { %633 = vmatpush.bf16.msra.mxu2 %v1019_v6  ;;  %v1025_v15 = vld [vmem:[%s1310_s1 + $0xe0] sm:$0xff]  ;;  %v1024_v20 = vld [vmem:[%s1310_s1 + $0xd8] sm:$0xff] }
   0x9   :  { %646 = vmatpush.bf16.msra.mxu3 %v1027_v7  ;;  %v63_v16 = vld [vmem:[%s1309_s0] sm:$0xff] }
   0xa   :  { %608 = vmatpush.bf16.msra.mxu0 %v1002_v8  ;;  %67 = vst [vmem:[#allocation1] ss:$4 sm:$0xff] %v63_v16 }
   0xb   :  { %621 = vmatpush.bf16.msra.mxu1 %v1010_v9 }
   0xc   :  { %634 = vmatpush.bf16.msra.mxu2 %v1018_v10 }
   0xd   :  { %647 = vmatpush.bf16.msra.mxu3 %v1026_v11 }
   0xe   :  { %609 = vmatpush.bf16.msra.mxu0 %v1001_v12 }
   0xf   :  { %622 = vmatpush.bf16.msra.mxu1 %v1009_v13 }
  0x10   :  { %635 = vmatpush.bf16.msra.mxu2 %v1017_v14 }
  0x11   :  { %648 = vmatpush.bf16.msra.mxu3 %v1025_v15 }
  0x12   :  { %610 = vmatpush.bf16.msra.mxu0 %v1000_v17 }
  0x13   :  { %623 = vmatpush.bf16.msra.mxu1 %v1008_v18 }
  0x14   :  { %7 = vsyncpa [#allocation3], 0  ;;  %636 = vmatpush.bf16.msra.mxu2 %v1016_v19  ;;  %v1015_v23 = vld [vmem:[%s1310_s1 + $0x90] sm:$0xff]  ;;  %v998_v25 = vld [vmem:[%s1310_s1 + $0x8] sm:$0xff]  ;;  %vm60_vm0 = vcmask 123904   ;;  %s720_s29 = sshll.u32 %s1311_s2, 4  ;;  %s721_s29 = int_to_ptr.hbm [resolvable:$true] %s720_s29 }
  0x15   :  { %649 = vmatpush.bf16.msra.mxu3 %v1024_v20  ;;  %v1023_v24 = vld [vmem:[%s1310_s1 + $0xd0] sm:$0xff]  ;;  %v1006_v26 = vld [vmem:[%s1310_s1 + $0x48] sm:$0xff]  ;;  %v997_v30 = vld [vmem:[%s1310_s1] sm:$0xff]  ;;  %v1089_v20 = vmov 0.0  }
  0x16   :  { %611 = vmatpush.bf16.msra.mxu0 %v999_v21  ;;  %v1014_v27 = vld [vmem:[%s1310_s1 + $0x88] sm:$0xff]  ;;  %v1005_v31 = vld [vmem:[%s1310_s1 + $0x40] sm:$0xff]  ;;  %v1036_v34 = vld [vmem:[%s1310_s1 + $0x138] sm:$0xff]  ;;  %61 = vst.msk [vmem:[#allocation2] sm:$0x3] %vm60_vm0, %v1089_v20 }
  0x17   :  { %624 = vmatpush.bf16.msra.mxu1 %v1007_v22  ;;  %v1022_v28 = vld [vmem:[%s1310_s1 + $0xc8] sm:$0xff]  ;;  %v1013_v32 = vld [vmem:[%s1310_s1 + $0x80] sm:$0xff]  ;;  %v1044_v35 = vld [vmem:[%s1310_s1 + $0x178] sm:$0xff] }
  0x18   :  { %637 = vmatpush.bf16.msra.mxu2 %v1015_v23  ;;  %v64_v29 = vld [vmem:[%s1309_s0 + $0x8] sm:$0xff]  ;;  %v1021_v33 = vld [vmem:[%s1310_s1 + $0xc0] sm:$0xff]  ;;  %v72_v36 = vld.sshfl [vmem:[#allocation1 + $0x10] sm:$0xff pattern:$0x73625140] }
  0x19   :  { %650 = vmatpush.bf16.msra.mxu3 %v1023_v24  ;;  %69 = vst [vmem:[#allocation1 + $0x20] ss:$4 sm:$0xff] %v64_v29  ;;  %v73_v37 = vld.sshfl [vmem:[#allocation1 + $0x18] sm:$0xff pattern:$0x73625140]  ;;  %v88_v42 = vpack.c.bf16 %v72_v36, %v72_v36  ;;  %v1035_v46 = vld [vmem:[%s1310_s1 + $0x130] sm:$0xff] }
  0x1a   :  { %612 = vmatpush.bf16.msra.mxu0 %v998_v25  ;;  %v70_v38 = vld.sshfl [vmem:[#allocation1] sm:$0xff pattern:$0x73625140]  ;;  %v71_v39 = vld.sshfl [vmem:[#allocation1 + $0x8] sm:$0xff pattern:$0x73625140]  ;;  %v89_v43 = vpack.c.bf16 %v73_v37, %v73_v37 }
  0x1b   :  { %625 = vmatpush.bf16.msra.mxu1 %v1006_v26  ;;  %v1052_v40 = vld [vmem:[%s1310_s1 + $0x1b8] sm:$0xff]  ;;  %v86_v44 = vpack.c.bf16 %v70_v38, %v70_v38  ;;  %v87_v45 = vpack.c.bf16 %v71_v39, %v71_v39  ;;  %v1043_v47 = vld [vmem:[%s1310_s1 + $0x170] sm:$0xff]  ;;  %v1034_v50 = vld [vmem:[%s1310_s1 + $0x128] sm:$0xff] }
  0x1c   :  { %638 = vmatpush.bf16.msra.mxu2 %v1014_v27  ;;  %v1060_v41 = vld [vmem:[%s1310_s1 + $0x1f8] sm:$0xff]  ;;  %v1051_v48 = vld [vmem:[%s1310_s1 + $0x1b0] sm:$0xff]  ;;  %v1042_v51 = vld [vmem:[%s1310_s1 + $0x168] sm:$0xff] }
  0x1d   :  { %651 = vmatpush.bf16.msra.mxu3 %v1022_v28  ;;  %v1059_v49 = vld [vmem:[%s1310_s1 + $0x1f0] sm:$0xff]  ;;  %v1050_v52 = vld [vmem:[%s1310_s1 + $0x1a8] sm:$0xff]  ;;  %v1033_v54 = vld [vmem:[%s1310_s1 + $0x120] sm:$0xff] }
  0x1e   :  { %613 = vmatpush.bf16.msra.mxu0 %v997_v30  ;;  %v1058_v53 = vld [vmem:[%s1310_s1 + $0x1e8] sm:$0xff]  ;;  %v1041_v55 = vld [vmem:[%s1310_s1 + $0x160] sm:$0xff]  ;;  %v1032_v58 = vld [vmem:[%s1310_s1 + $0x118] sm:$0xff] }
  0x1f   :  { %626 = vmatpush.bf16.msra.mxu1 %v1005_v31  ;;  %v1049_v56 = vld [vmem:[%s1310_s1 + $0x1a0] sm:$0xff]  ;;  %v1040_v59 = vld [vmem:[%s1310_s1 + $0x158] sm:$0xff]  ;;  %v1031_v62 = vld [vmem:[%s1310_s1 + $0x110] sm:$0xff] }
  0x20   :  { %639 = vmatpush.bf16.msra.mxu2 %v1013_v32  ;;  %v1057_v57 = vld [vmem:[%s1310_s1 + $0x1e0] sm:$0xff]  ;;  %v1048_v60 = vld [vmem:[%s1310_s1 + $0x198] sm:$0xff]  ;;  %v1039_v63 = vld [vmem:[%s1310_s1 + $0x150] sm:$0xff] }
  0x21   :  { %652 = vmatpush.bf16.msra.mxu3 %v1021_v33  ;;  %614 = vmatmul.bf16.vlgmr.msra.gmra.mxu0 %v86_v44  ;;  %v1056_v61 = vld [vmem:[%s1310_s1 + $0x1d8] sm:$0xff]  ;;  %v1047_v0 = vld [vmem:[%s1310_s1 + $0x190] sm:$0xff]  ;;  %v1030_v2 = vld [vmem:[%s1310_s1 + $0x108] sm:$0xff] }
  0x22   :  { %658 = vmatpush.bf16.msrb.mxu0 %v1036_v34  ;;  %627 = vmatmul.bf16.vlgmr.msra.gmra.mxu1 %v87_v45  ;;  %v1055_v1 = vld [vmem:[%s1310_s1 + $0x1d0] sm:$0xff]  ;;  %v1038_v3 = vld [vmem:[%s1310_s1 + $0x148] sm:$0xff]  ;;  %v1029_v6 = vld [vmem:[%s1310_s1 + $0x100] sm:$0xff] }
  0x23   :  { %671 = vmatpush.bf16.msrb.mxu1 %v1044_v35  ;;  %640 = vmatmul.bf16.vlgmr.msra.gmra.mxu2 %v88_v42  ;;  %v1046_v4 = vld [vmem:[%s1310_s1 + $0x188] sm:$0xff]  ;;  %v1037_v7 = vld [vmem:[%s1310_s1 + $0x140] sm:$0xff]  ;;  %v76_v12 = vld.sshfl [vmem:[#allocation1 + $0x30] sm:$0xff pattern:$0x73625140] }
  0x24   :  { %684 = vmatpush.bf16.msrb.mxu2 %v1052_v40  ;;  %653 = vmatmul.bf16.vlgmr.msra.gmra.mxu3 %v89_v43  ;;  %v1054_v5 = vld [vmem:[%s1310_s1 + $0x1c8] sm:$0xff]  ;;  %v1045_v8 = vld [vmem:[%s1310_s1 + $0x180] sm:$0xff]  ;;  %v77_v13 = vld.sshfl [vmem:[#allocation1 + $0x38] sm:$0xff pattern:$0x73625140]  ;;  %v92_v16 = vpack.c.bf16 %v76_v12, %v76_v12 }
  0x25   :  { %697 = vmatpush.bf16.msrb.mxu3 %v1060_v41  ;;  %v1053_v9 = vld [vmem:[%s1310_s1 + $0x1c0] sm:$0xff]  ;;  %v75_v11 = vld.sshfl [vmem:[#allocation1 + $0x28] sm:$0xff pattern:$0x73625140]  ;;  %v93_v17 = vpack.c.bf16 %v77_v13, %v77_v13  ;;  %s1090_s1 = smov [#allocation2]  }
  0x26   :  { %659 = vmatpush.bf16.msrb.mxu0 %v1035_v46  ;;  %v74_v10 = vld.sshfl [vmem:[#allocation1 + $0x20] sm:$0xff pattern:$0x73625140]  ;;  %v91_v15 = vpack.c.bf16 %v75_v11, %v75_v11  ;;  %v62_v39 = vld [vmem:[#allocation2] sm:$0x3]  ;;  %s718_s26 = sshll.u32 %s1090_s1, 4  ;;  %s719_s26 = int_to_ptr.vmem [resolvable:$true] %s718_s26 }
  0x27   :  { %672 = vmatpush.bf16.msrb.mxu1 %v1043_v47  ;;  %v90_v14 = vpack.c.bf16 %v74_v10, %v74_v10 }
  0x28   :  { %685 = vmatpush.bf16.msrb.mxu2 %v1051_v48 }
  0x29   :  { %698 = vmatpush.bf16.msrb.mxu3 %v1059_v49 }
  0x2a   :  { %660 = vmatpush.bf16.msrb.mxu0 %v1034_v50 }
  0x2b   :  { %673 = vmatpush.bf16.msrb.mxu1 %v1042_v51 }
  0x2c   :  { %686 = vmatpush.bf16.msrb.mxu2 %v1050_v52 }
  0x2d   :  { %699 = vmatpush.bf16.msrb.mxu3 %v1058_v53 }
  0x2e   :  { %661 = vmatpush.bf16.msrb.mxu0 %v1033_v54 }
  0x2f   :  { %674 = vmatpush.bf16.msrb.mxu1 %v1041_v55 }
  0x30   :  { %687 = vmatpush.bf16.msrb.mxu2 %v1049_v56 }
  0x31   :  { %700 = vmatpush.bf16.msrb.mxu3 %v1057_v57 }
  0x32   :  { %662 = vmatpush.bf16.msrb.mxu0 %v1032_v58 }
  0x33   :  { %675 = vmatpush.bf16.msrb.mxu1 %v1040_v59 }
  0x34   :  { %688 = vmatpush.bf16.msrb.mxu2 %v1048_v60 }
  0x35   :  { %701 = vmatpush.bf16.msrb.mxu3 %v1056_v61 }
  0x36   :  { %663 = vmatpush.bf16.msrb.mxu0 %v1031_v62 }
  0x37   :  { %676 = vmatpush.bf16.msrb.mxu1 %v1039_v63 }
  0x38   :  { %689 = vmatpush.bf16.msrb.mxu2 %v1047_v0 }
  0x39   :  { %702 = vmatpush.bf16.msrb.mxu3 %v1055_v1 }
  0x3a   :  { %664 = vmatpush.bf16.msrb.mxu0 %v1030_v2 }
  0x3b   :  { %677 = vmatpush.bf16.msrb.mxu1 %v1038_v3 }
  0x3c   :  { %690 = vmatpush.bf16.msrb.mxu2 %v1046_v4 }
  0x3d   :  { %703 = vmatpush.bf16.msrb.mxu3 %v1054_v5 }
  0x3e   :  { %665 = vmatpush.bf16.msrb.mxu0 %v1029_v6 }
  0x3f   :  { %678 = vmatpush.bf16.msrb.mxu1 %v1037_v7 }
  0x40   :  { %691 = vmatpush.bf16.msrb.mxu2 %v1045_v8 }
  0x41   :  { %704 = vmatpush.bf16.msrb.mxu3 %v1053_v9  ;;  %666 = vmatmul.bf16.vlgmr.msrb.gmra.mxu0 %v90_v14 }
  0x42   :  { %679 = vmatmul.bf16.vlgmr.msrb.gmra.mxu1 %v91_v15 }
  0x43   :  { %692 = vmatmul.bf16.vlgmr.msrb.gmra.mxu2 %v92_v16 }
  0x44   :  { %705 = vmatmul.bf16.vlgmr.msrb.gmra.mxu3 %v93_v17 }
  0x9e   :  { %v615_v18 = vpop.f32.mrf.mxu0 }
  0x9f   :  { %v628_v19 = vpop.f32.mrf.mxu1 }
  0xa0   :  { %v629_v27 = vadd.f32 %v628_v19, %v615_v18 }
  0xa6   :  { %v641_v21 = vpop.f32.mrf.mxu2  ;;  %v617_v23 = vpop.f32.mrf.mxu0 }
  0xa7   :  { %v654_v22 = vpop.f32.mrf.mxu3  ;;  %v630_v24 = vpop.f32.mrf.mxu1  ;;  %v642_v28 = vadd.f32 %v641_v21, %v629_v27 }
  0xa9   :  { %v655_v29 = vadd.f32 %v654_v22, %v642_v28 }
  0xae   :  { %v643_v25 = vpop.f32.mrf.mxu2 }
  0xaf   :  { %v656_v26 = vpop.f32.mrf.mxu3 }
  0xbe   :  { %v667_v30 = vpop.f32.mrf.mxu0 }
  0xbf   :  { %v680_v31 = vpop.f32.mrf.mxu1  ;;  %v668_v32 = vadd.f32 %v667_v30, %v655_v29 }
  0xc1   :  { %v681_v33 = vadd.f32 %v680_v31, %v668_v32 }
  0xc6   :  { %v693_v34 = vpop.f32.mrf.mxu2  ;;  %v669_v37 = vpop.f32.mrf.mxu0 }
  0xc7   :  { %v706_v35 = vpop.f32.mrf.mxu3  ;;  %v694_v36 = vadd.f32 %v693_v34, %v681_v33  ;;  %v682_v38 = vpop.f32.mrf.mxu1 }
  0xc9   :  { %v707_v40 = vadd.f32 %v706_v35, %v694_v36 }
  0xcb   :  { %v710_v41 = vadd.f32 %v707_v40, %v62_v39 }
  0xcd   :  { %712 = vst.msk [vmem:[#allocation2] sm:$0x3] %vm60_vm0, %v710_v41 }
  0xce   :  { %v695_v42 = vpop.f32.mrf.mxu2  ;;  %723 = dma.vmem_to_hbm [thread:$0]  %s719_s26, 32, %s721_s29, [#allocation3]  }
  0xcf   :  { %v708_v43 = vpop.f32.mrf.mxu3 }
  0xd0   :  { %1087 = dma.done.wait [#allocation3], 32  }
  0xd1   :  { %1088 = vsyncadd [#allocation3], 4294967264 }
  0xd2   :  { %728 = vsyncpa [#allocation3], 1 }

</bundles_post_ra>
